<compile_context>
chip_gen: v7x
topology: tpu7x:2x2x1
jax: 0.10.0
libtpu: 0.0.40
codegen_flags: <defaults>
</compile_context>

<pallas_src>
import jax
import jax.numpy as jnp
from jax.experimental import pallas as pl
from jax.experimental.pallas import tpu as pltpu

LANE = 128


def _round_up(v, m):
    return ((v + m - 1) // m) * m


def policy_net_kernel(x_ref, w1t_ref, b1_ref, w2t_ref, b2_ref, out_ref):
    """Lane-dense (feature-major) PolicyNet forward.

    x_ref:   [n_states, TB]   (batch on the lane axis)
    w1t_ref: [hidden, n_states]
    b1_ref:  [hidden, 1]
    w2t_ref: [n_actions, hidden]
    b2_ref:  [n_actions, 1]
    out_ref: [n_actions, TB]
    """
    hidden, n_states = w1t_ref.shape
    n_actions = w2t_ref.shape[0]
    tb = x_ref.shape[-1]

    x = x_ref[...]
    w1t = w1t_ref[...]
    w2t = w2t_ref[...]

    # Layer 1 (K = n_states, tiny): broadcast FMAs on the VPU instead of an
    # MXU matmul that would be <1% utilized and pay push/pop latency per step.
    h = jnp.broadcast_to(b1_ref[...], (hidden, tb))
    for k in range(n_states):
        h = h + w1t[:, k:k + 1] * x[k:k + 1, :]
    h = jnp.tanh(h)

    # Layer 2 (K = hidden): same treatment.
    logits = jnp.broadcast_to(b2_ref[...], (n_actions, tb))
    for j in range(hidden):
        logits = logits + w2t[:, j:j + 1] * h[j:j + 1, :]

    # Softmax across the n_actions sublane rows. Exact math so every column
    # sums to 1 (the approx reciprocal shortcut previously broke this).
    if n_actions == 2:
        p0 = jax.nn.sigmoid(logits[0:1, :] - logits[1:2, :])
        probs = jnp.concatenate([p0, 1.0 - p0], axis=0)
    else:
        m = jnp.max(logits, axis=0, keepdims=True)
        e = jnp.exp(logits - m)
        probs = e / jnp.sum(e, axis=0, keepdims=True)

    out_ref[...] = probs.astype(out_ref.dtype)


def policy_net_forward(x, w1, b1, w2, b2, *, block_batch=16384,
                       out_dtype=jnp.float32):
    """x: [B, n_states]; returns softmax probs [B, n_actions] (PyTorch semantics).

    Internally uses a feature-major, lane-dense layout: the batch dimension is
    mapped onto the 128-wide lane axis so the narrow feature dims sit on
    sublanes instead of being padded out to 128 lanes.
    """
    B, n_states = x.shape
    hidden = w1.shape[1]
    n_actions = w2.shape[1]

    x_t = jnp.transpose(x)                    # [n_states, B], batch on lanes
    w1_t = jnp.transpose(w1)                  # [hidden, n_states]
    w2_t = jnp.transpose(w2)                  # [n_actions, hidden]
    b1_c = jnp.reshape(b1, (hidden, 1))
    b2_c = jnp.reshape(b2, (n_actions, 1))

    block_batch = max(LANE, _round_up(block_batch, LANE))

    if B % LANE == 0 and B >= 2 * LANE:
        # Lane-aligned batch: pick a 128-multiple tile that divides B exactly
        # (no HBM padding copy) and keep >=2 grid steps so the "parallel"
        # batch axis can shard across v7x's two TensorCores.
        tb = min(block_batch, _round_up(B // 2, LANE))
        while B % tb:
            tb -= LANE
        padded_b = B
    elif B <= block_batch:
        # Single tile covering the whole batch: block == full array dim, so no
        # 128-alignment requirement and no padding.
        tb = B
        padded_b = B
    else:
        # Ragged batch larger than a tile: fall back to padding the lane axis.
        tb = block_batch
        padded_b = _round_up(B, tb)
        x_t = jnp.pad(x_t, ((0, 0), (0, padded_b - B)))

    grid = (padded_b // tb,)

    out_t = pl.pallas_call(
        policy_net_kernel,
        out_shape=jax.ShapeDtypeStruct((n_actions, padded_b), out_dtype),
        grid=grid,
        in_specs=[
            # x streams one lane-dense batch tile per grid step.
            pl.BlockSpec((n_states, tb), lambda i: (0, i)),
            # Weights / biases: constant block index -> resident in VMEM.
            pl.BlockSpec((hidden, n_states), lambda i: (0, 0)),
            pl.BlockSpec((hidden, 1), lambda i: (0, 0)),
            pl.BlockSpec((n_actions, hidden), lambda i: (0, 0)),
            pl.BlockSpec((n_actions, 1), lambda i: (0, 0)),
        ],
        out_specs=pl.BlockSpec((n_actions, tb), lambda i: (0, i)),
        compiler_params=pltpu.CompilerParams(
            dimension_semantics=("parallel",),
        ),
    )(x_t, w1_t, b1_c, w2_t, b2_c)

    return jnp.transpose(out_t[:, :B])        # [B, n_actions]


def init_policy_net_params(key, n_states, n_actions, hidden=10):
    """PyTorch-Linear-style init: U(-1/sqrt(fan_in), +1/sqrt(fan_in))."""
    k1, k2, k3, k4 = jax.random.split(key, 4)
    bound1 = 1.0 / jnp.sqrt(jnp.float32(n_states))
    bound2 = 1.0 / jnp.sqrt(jnp.float32(hidden))
    w1 = jax.random.uniform(k1, (n_states, hidden), jnp.float32, -bound1, bound1)
    b1 = jax.random.uniform(k2, (hidden,), jnp.float32, -bound1, bound1)
    w2 = jax.random.uniform(k3, (hidden, n_actions), jnp.float32, -bound2, bound2)
    b2 = jax.random.uniform(k4, (n_actions,), jnp.float32, -bound2, bound2)
    return w1, b1, w2, b2


def reference_forward(x, w1, b1, w2, b2):
    h = jnp.tanh(x @ w1 + b1)
    return jax.nn.softmax(h @ w2 + b2, axis=-1)


if __name__ == "__main__":
    # CartPole-like shapes: n_states=4, n_actions=2, hidden=10.
    n_states, n_actions, hidden = 4, 2, 10
    key = jax.random.PRNGKey(0)
    kp, kx1, kx2, kx3, kx4 = jax.random.split(key, 5)
    w1, b1, w2, b2 = init_policy_net_params(kp, n_states, n_actions, hidden)

    PROB_TOL = 1e-3   # probs vs pure-JAX reference
    SUM_TOL = 1e-5    # exact softmax: every row must sum to 1

    def check(x, **kw):
        probs = jax.block_until_ready(policy_net_forward(x, w1, b1, w2, b2, **kw))
        ref = reference_forward(x, w1, b1, w2, b2)
        assert probs.shape == ref.shape
        assert jnp.allclose(probs, ref, atol=PROB_TOL, rtol=PROB_TOL)
        assert jnp.allclose(jnp.sum(probs, axis=-1), 1.0, atol=SUM_TOL)

    # Tiny batch: single full-array block, no padding, sigmoid-specialized softmax.
    check(jax.random.normal(kx1, (8, n_states), jnp.float32))

    # Ragged batch below block_batch: still a single unpadded block.
    check(jax.random.normal(kx2, (300, n_states), jnp.float32))

    # Lane-aligned batch with small tiles: multi-step grid, no padding.
    check(jax.random.normal(kx3, (512, n_states), jnp.float32), block_batch=128)

    # Ragged batch larger than the tile: padded multi-step grid path.
    check(jax.random.normal(kx4, (300, n_states), jnp.float32), block_batch=128)

    # Generic softmax path (n_actions != 2).
    w1g, b1g, w2g, b2g = init_policy_net_params(kp, n_states, 5, hidden)
    xg = jax.random.normal(kx1, (64, n_states), jnp.float32)
    probs_g = jax.block_until_ready(policy_net_forward(xg, w1g, b1g, w2g, b2g))
    ref_g = reference_forward(xg, w1g, b1g, w2g, b2g)
    assert jnp.allclose(probs_g, ref_g, atol=PROB_TOL, rtol=PROB_TOL)
    assert jnp.allclose(jnp.sum(probs_g, axis=-1), 1.0, atol=SUM_TOL)

    print("KERNEL_OK")
</pallas_src>

<mosaic_0001>
module attributes {stable_mosaic.version = 11 : i64} {
  func.func @policy_net_kernel(%arg0: i32, %arg1: memref<4x8xf32, #tpu.memory_space<vmem>>, %arg2: memref<10x4xf32, #tpu.memory_space<vmem>>, %arg3: memref<10x1xf32, #tpu.memory_space<vmem>>, %arg4: memref<2x10xf32, #tpu.memory_space<vmem>>, %arg5: memref<2x1xf32, #tpu.memory_space<vmem>>, %arg6: memref<2x8xf32, #tpu.memory_space<vmem>>) attributes {dimension_semantics = [#tpu.dimension_semantics<parallel>], iteration_bounds = array<i64: 1>, scalar_prefetch = 0 : i64, scratch_operands = 0 : i64, tpu.core_type = #tpu.core_type<tc>, window_params = [{transform_indices = @transform_0, window_bounds = array<i64: 4, 8>}, {pipeline_mode = #tpu.pipeline_mode<synchronous>, transform_indices = @transform_1, window_bounds = array<i64: 10, 4>}, {pipeline_mode = #tpu.pipeline_mode<synchronous>, transform_indices = @transform_2, window_bounds = array<i64: 10, 1>}, {pipeline_mode = #tpu.pipeline_mode<synchronous>, transform_indices = @transform_3, window_bounds = array<i64: 2, 10>}, {pipeline_mode = #tpu.pipeline_mode<synchronous>, transform_indices = @transform_4, window_bounds = array<i64: 2, 1>}, {transform_indices = @transform_5, window_bounds = array<i64: 2, 8>}]} {
    %c0 = arith.constant 0 : index
    %c0_0 = arith.constant 0 : index
    %0 = vector.load %arg1[%c0, %c0_0] : memref<4x8xf32, #tpu.memory_space<vmem>>, vector<4x8xf32>
    %c0_1 = arith.constant 0 : index
    %c0_2 = arith.constant 0 : index
    %1 = vector.load %arg2[%c0_1, %c0_2] : memref<10x4xf32, #tpu.memory_space<vmem>>, vector<10x4xf32>
    %c0_3 = arith.constant 0 : index
    %c0_4 = arith.constant 0 : index
    %2 = vector.load %arg4[%c0_3, %c0_4] : memref<2x10xf32, #tpu.memory_space<vmem>>, vector<2x10xf32>
    %c0_5 = arith.constant 0 : index
    %c0_6 = arith.constant 0 : index
    %3 = vector.load %arg3[%c0_5, %c0_6] : memref<10x1xf32, #tpu.memory_space<vmem>>, vector<10x1xf32>
    %4 = vector.shape_cast %3 : vector<10x1xf32> to vector<10x1xf32>
    %5 = vector.broadcast %4 : vector<10x1xf32> to vector<10x8xf32>
    %6 = vector.extract_strided_slice %1 {offsets = [0, 0], sizes = [10, 1], strides = [1, 1]} : vector<10x4xf32> to vector<10x1xf32>
    %7 = vector.extract_strided_slice %0 {offsets = [0, 0], sizes = [1, 8], strides = [1, 1]} : vector<4x8xf32> to vector<1x8xf32>
    %8 = vector.broadcast %6 : vector<10x1xf32> to vector<10x8xf32>
    %9 = vector.broadcast %7 : vector<1x8xf32> to vector<10x8xf32>
    %10 = arith.mulf %8, %9 : vector<10x8xf32>
    %11 = arith.addf %5, %10 : vector<10x8xf32>
    %12 = vector.extract_strided_slice %1 {offsets = [0, 1], sizes = [10, 1], strides = [1, 1]} : vector<10x4xf32> to vector<10x1xf32>
    %13 = vector.extract_strided_slice %0 {offsets = [1, 0], sizes = [1, 8], strides = [1, 1]} : vector<4x8xf32> to vector<1x8xf32>
    %14 = vector.broadcast %12 : vector<10x1xf32> to vector<10x8xf32>
    %15 = vector.broadcast %13 : vector<1x8xf32> to vector<10x8xf32>
    %16 = arith.mulf %14, %15 : vector<10x8xf32>
    %17 = arith.addf %11, %16 : vector<10x8xf32>
    %18 = vector.extract_strided_slice %1 {offsets = [0, 2], sizes = [10, 1], strides = [1, 1]} : vector<10x4xf32> to vector<10x1xf32>
    %19 = vector.extract_strided_slice %0 {offsets = [2, 0], sizes = [1, 8], strides = [1, 1]} : vector<4x8xf32> to vector<1x8xf32>
    %20 = vector.broadcast %18 : vector<10x1xf32> to vector<10x8xf32>
    %21 = vector.broadcast %19 : vector<1x8xf32> to vector<10x8xf32>
    %22 = arith.mulf %20, %21 : vector<10x8xf32>
    %23 = arith.addf %17, %22 : vector<10x8xf32>
    %24 = vector.extract_strided_slice %1 {offsets = [0, 3], sizes = [10, 1], strides = [1, 1]} : vector<10x4xf32> to vector<10x1xf32>
    %25 = vector.extract_strided_slice %0 {offsets = [3, 0], sizes = [1, 8], strides = [1, 1]} : vector<4x8xf32> to vector<1x8xf32>
    %26 = vector.broadcast %24 : vector<10x1xf32> to vector<10x8xf32>
    %27 = vector.broadcast %25 : vector<1x8xf32> to vector<10x8xf32>
    %28 = arith.mulf %26, %27 : vector<10x8xf32>
    %29 = arith.addf %23, %28 : vector<10x8xf32>
    %30 = math.tanh %29 : vector<10x8xf32>
    %c0_7 = arith.constant 0 : index
    %c0_8 = arith.constant 0 : index
    %31 = vector.load %arg5[%c0_7, %c0_8] : memref<2x1xf32, #tpu.memory_space<vmem>>, vector<2x1xf32>
    %32 = vector.shape_cast %31 : vector<2x1xf32> to vector<2x1xf32>
    %33 = vector.broadcast %32 : vector<2x1xf32> to vector<2x8xf32>
    %34 = vector.extract_strided_slice %2 {offsets = [0, 0], sizes = [2, 1], strides = [1, 1]} : vector<2x10xf32> to vector<2x1xf32>
    %35 = vector.extract_strided_slice %30 {offsets = [0, 0], sizes = [1, 8], strides = [1, 1]} : vector<10x8xf32> to vector<1x8xf32>
    %36 = vector.broadcast %34 : vector<2x1xf32> to vector<2x8xf32>
    %37 = vector.broadcast %35 : vector<1x8xf32> to vector<2x8xf32>
    %38 = arith.mulf %36, %37 : vector<2x8xf32>
    %39 = arith.addf %33, %38 : vector<2x8xf32>
    %40 = vector.extract_strided_slice %2 {offsets = [0, 1], sizes = [2, 1], strides = [1, 1]} : vector<2x10xf32> to vector<2x1xf32>
    %41 = vector.extract_strided_slice %30 {offsets = [1, 0], sizes = [1, 8], strides = [1, 1]} : vector<10x8xf32> to vector<1x8xf32>
    %42 = vector.broadcast %40 : vector<2x1xf32> to vector<2x8xf32>
    %43 = vector.broadcast %41 : vector<1x8xf32> to vector<2x8xf32>
    %44 = arith.mulf %42, %43 : vector<2x8xf32>
    %45 = arith.addf %39, %44 : vector<2x8xf32>
    %46 = vector.extract_strided_slice %2 {offsets = [0, 2], sizes = [2, 1], strides = [1, 1]} : vector<2x10xf32> to vector<2x1xf32>
    %47 = vector.extract_strided_slice %30 {offsets = [2, 0], sizes = [1, 8], strides = [1, 1]} : vector<10x8xf32> to vector<1x8xf32>
    %48 = vector.broadcast %46 : vector<2x1xf32> to vector<2x8xf32>
    %49 = vector.broadcast %47 : vector<1x8xf32> to vector<2x8xf32>
    %50 = arith.mulf %48, %49 : vector<2x8xf32>
    %51 = arith.addf %45, %50 : vector<2x8xf32>
    %52 = vector.extract_strided_slice %2 {offsets = [0, 3], sizes = [2, 1], strides = [1, 1]} : vector<2x10xf32> to vector<2x1xf32>
    %53 = vector.extract_strided_slice %30 {offsets = [3, 0], sizes = [1, 8], strides = [1, 1]} : vector<10x8xf32> to vector<1x8xf32>
    %54 = vector.broadcast %52 : vector<2x1xf32> to vector<2x8xf32>
    %55 = vector.broadcast %53 : vector<1x8xf32> to vector<2x8xf32>
    %56 = arith.mulf %54, %55 : vector<2x8xf32>
    %57 = arith.addf %51, %56 : vector<2x8xf32>
    %58 = vector.extract_strided_slice %2 {offsets = [0, 4], sizes = [2, 1], strides = [1, 1]} : vector<2x10xf32> to vector<2x1xf32>
    %59 = vector.extract_strided_slice %30 {offsets = [4, 0], sizes = [1, 8], strides = [1, 1]} : vector<10x8xf32> to vector<1x8xf32>
    %60 = vector.broadcast %58 : vector<2x1xf32> to vector<2x8xf32>
    %61 = vector.broadcast %59 : vector<1x8xf32> to vector<2x8xf32>
    %62 = arith.mulf %60, %61 : vector<2x8xf32>
    %63 = arith.addf %57, %62 : vector<2x8xf32>
    %64 = vector.extract_strided_slice %2 {offsets = [0, 5], sizes = [2, 1], strides = [1, 1]} : vector<2x10xf32> to vector<2x1xf32>
    %65 = vector.extract_strided_slice %30 {offsets = [5, 0], sizes = [1, 8], strides = [1, 1]} : vector<10x8xf32> to vector<1x8xf32>
    %66 = vector.broadcast %64 : vector<2x1xf32> to vector<2x8xf32>
    %67 = vector.broadcast %65 : vector<1x8xf32> to vector<2x8xf32>
    %68 = arith.mulf %66, %67 : vector<2x8xf32>
    %69 = arith.addf %63, %68 : vector<2x8xf32>
    %70 = vector.extract_strided_slice %2 {offsets = [0, 6], sizes = [2, 1], strides = [1, 1]} : vector<2x10xf32> to vector<2x1xf32>
    %71 = vector.extract_strided_slice %30 {offsets = [6, 0], sizes = [1, 8], strides = [1, 1]} : vector<10x8xf32> to vector<1x8xf32>
    %72 = vector.broadcast %70 : vector<2x1xf32> to vector<2x8xf32>
    %73 = vector.broadcast %71 : vector<1x8xf32> to vector<2x8xf32>
    %74 = arith.mulf %72, %73 : vector<2x8xf32>
    %75 = arith.addf %69, %74 : vector<2x8xf32>
    %76 = vector.extract_strided_slice %2 {offsets = [0, 7], sizes = [2, 1], strides = [1, 1]} : vector<2x10xf32> to vector<2x1xf32>
    %77 = vector.extract_strided_slice %30 {offsets = [7, 0], sizes = [1, 8], strides = [1, 1]} : vector<10x8xf32> to vector<1x8xf32>
    %78 = vector.broadcast %76 : vector<2x1xf32> to vector<2x8xf32>
    %79 = vector.broadcast %77 : vector<1x8xf32> to vector<2x8xf32>
    %80 = arith.mulf %78, %79 : vector<2x8xf32>
    %81 = arith.addf %75, %80 : vector<2x8xf32>
    %82 = vector.extract_strided_slice %2 {offsets = [0, 8], sizes = [2, 1], strides = [1, 1]} : vector<2x10xf32> to vector<2x1xf32>
    %83 = vector.extract_strided_slice %30 {offsets = [8, 0], sizes = [1, 8], strides = [1, 1]} : vector<10x8xf32> to vector<1x8xf32>
    %84 = vector.broadcast %82 : vector<2x1xf32> to vector<2x8xf32>
    %85 = vector.broadcast %83 : vector<1x8xf32> to vector<2x8xf32>
    %86 = arith.mulf %84, %85 : vector<2x8xf32>
    %87 = arith.addf %81, %86 : vector<2x8xf32>
    %88 = vector.extract_strided_slice %2 {offsets = [0, 9], sizes = [2, 1], strides = [1, 1]} : vector<2x10xf32> to vector<2x1xf32>
    %89 = vector.extract_strided_slice %30 {offsets = [9, 0], sizes = [1, 8], strides = [1, 1]} : vector<10x8xf32> to vector<1x8xf32>
    %90 = vector.broadcast %88 : vector<2x1xf32> to vector<2x8xf32>
    %91 = vector.broadcast %89 : vector<1x8xf32> to vector<2x8xf32>
    %92 = arith.mulf %90, %91 : vector<2x8xf32>
    %93 = arith.addf %87, %92 : vector<2x8xf32>
    %94 = vector.extract_strided_slice %93 {offsets = [0, 0], sizes = [1, 8], strides = [1, 1]} : vector<2x8xf32> to vector<1x8xf32>
    %95 = vector.extract_strided_slice %93 {offsets = [1, 0], sizes = [1, 8], strides = [1, 1]} : vector<2x8xf32> to vector<1x8xf32>
    %96 = arith.subf %94, %95 : vector<1x8xf32>
    %97 = arith.negf %96 : vector<1x8xf32>
    %98 = math.exp %97 : vector<1x8xf32>
    %cst = arith.constant 1.000000e+00 : f32
    %99 = vector.broadcast %cst : f32 to vector<1x8xf32>
    %100 = arith.addf %99, %98 : vector<1x8xf32>
    %101 = arith.divf %99, %100 : vector<1x8xf32>
    %cst_9 = arith.constant 1.000000e+00 : f32
    %102 = vector.broadcast %cst_9 : f32 to vector<1x8xf32>
    %103 = arith.subf %102, %101 : vector<1x8xf32>
    %104 = tpu.concatenate %101, %103 in 0 : vector<1x8xf32>, vector<1x8xf32> -> vector<2x8xf32>
    %c0_10 = arith.constant 0 : index
    %c0_11 = arith.constant 0 : index
    %105 = vector.load %arg6[%c0_10, %c0_11] : memref<2x8xf32, #tpu.memory_space<vmem>>, vector<2x8xf32>
    tpu.vector_store %arg6[%c0_10, %c0_11], %104 {strides = array<i32>} : memref<2x8xf32, #tpu.memory_space<vmem>>, vector<2x8xf32>,
    return
  }
  func.func @transform_0(%arg0: i32) -> (i32, i32) {
    %c0_i32 = arith.constant 0 : i32
    %c0_i32_0 = arith.constant 0 : i32
    return %c0_i32, %arg0 : i32, i32
  }
  func.func @transform_1(%arg0: i32) -> (i32, i32) {
    %c0_i32 = arith.constant 0 : i32
    %c0_i32_0 = arith.constant 0 : i32
    %c0_i32_1 = arith.constant 0 : i32
    return %c0_i32, %c0_i32_0 : i32, i32
  }
  func.func @transform_2(%arg0: i32) -> (i32, i32) {
    %c0_i32 = arith.constant 0 : i32
    %c0_i32_0 = arith.constant 0 : i32
    %c0_i32_1 = arith.constant 0 : i32
    return %c0_i32, %c0_i32_0 : i32, i32
  }
  func.func @transform_3(%arg0: i32) -> (i32, i32) {
    %c0_i32 = arith.constant 0 : i32
    %c0_i32_0 = arith.constant 0 : i32
    %c0_i32_1 = arith.constant 0 : i32
    return %c0_i32, %c0_i32_0 : i32, i32
  }
  func.func @transform_4(%arg0: i32) -> (i32, i32) {
    %c0_i32 = arith.constant 0 : i32
    %c0_i32_0 = arith.constant 0 : i32
    %c0_i32_1 = arith.constant 0 : i32
    return %c0_i32, %c0_i32_0 : i32, i32
  }
  func.func @transform_5(%arg0: i32) -> (i32, i32) {
    %c0_i32 = arith.constant 0 : i32
    %c0_i32_0 = arith.constant 0 : i32
    return %c0_i32, %arg0 : i32, i32
  }
}

</mosaic_0001>

<bundles_post_ra>
// kernel: tpu_custom_call.1
= control target key start
LH: loop header
LB: loop body
LE: loop exit
PB: predicated region body
PF: predicated region fallthrough
CT: control target
= control target key end

     0   :  { %v308_v1 = vmov 1   ;;  %v309_v2 = vmov 0   ;;  %s402_s0 = inlined_call_operand.vmem [shape: f32[4,8], index: 0, kind: input, shape index: {}]   ;;  %s403_s1 = inlined_call_operand.vmem [shape: f32[10,4], index: 1, kind: input, shape index: {}]   ;;  %s404_s2 = inlined_call_operand.vmem [shape: f32[10,1], index: 2, kind: input, shape index: {}]   ;;  %s405_s3 = inlined_call_operand.vmem [shape: f32[2,10], index: 3, kind: input, shape index: {}]   ;;  %s406_s4 = inlined_call_operand.vmem [shape: f32[2,1], index: 4, kind: input, shape index: {}]   ;;  %s407_s5 = inlined_call_operand.hbm [shape: f32[2,8], index: 5, kind: output, shape index: {}]  }
   0x1   :  { %v22_v0 = vld [vmem:[%s403_s1] sm:$0xff]  ;;  %257 = vset.pattern.permute.xlu1 %v308_v1  ;;  %256 = vset.pattern.permute.xlu0 %v309_v2 }
   0x2   :  { %56 = vperm.xlu1 %257, %v22_v0   ;;  %39 = vperm.xlu0 %256, %v22_v0   ;;  %v25_v3 = vld [vmem:[%s404_s2] sm:$0xff] }
   0x3   :  { %10 = vsyncpa [#allocation3], 0  ;;  %v310_v4 = vmov 2   ;;  %v23_v5 = vld [vmem:[%s403_s1 + $0x8] sm:$0x3]  ;;  %v311_v6 = vmov 3   ;;  %v47_v16 = vlaneseq }
   0x4   :  { %v26_v7 = vld [vmem:[%s404_s2 + $0x8] sm:$0x3]  ;;  %v24_v8 = vld [vmem:[%s405_s3] sm:$0x3]  ;;  %v312_v10 = vmov 5   ;;  %v313_v11 = vmov 8  }
   0x5   :  { %v105_v9 = vld [vmem:[%s406_s4] sm:$0x3]  ;;  %v314_v12 = vmov 9   ;;  %v315_v13 = vmov 4   ;;  %v316_v14 = vmov 6   ;;  %v317_v15 = vmov 7  }
   0x6   :  { %258 = vset.pattern.permute.xlu1 %v310_v4  ;;  %29 = vperm.xlu0 %256, %v25_v3   ;;  %v367_v17 = vshrl.u32 %v47_v16, 7  ;;  %v21_v19 = vld [vmem:[%s402_s0] sm:$0xf]  ;;  %s318_s0 = smov [#allocation2]   ;;  %vm226_vm0 = vcmask 1040384   ;;  %vm228_vm1 = vcmask 58368  }
   0x7   :  { %72 = vperm.xlu1 %258, %v22_v0   ;;  %s236_s4 = sshll.u32 %s318_s0, 4  ;;  %s237_s4 = int_to_ptr.vmem [resolvable:$true] %s236_s4 }
   0x8   :  { %v370_v18 = vsub.s32 0, %v367_v17  ;;  %v376_v20 = vsub.s32 1, %v367_v17  ;;  %v81_v22 = vsub.s32 2, %v367_v17  ;;  %v97_v28 = vsub.s32 3, %v367_v17  ;;  %s284_s29 = scalar_lea.vmem %s237_s4, 32  ;;  %p289_p1 = scmp.lt.s32.totalorder %s237_s4, %s237_s4 }
   0x9   :  { %p285_p0 = scmp.ne.s32.totalorder %s237_s4, %s284_s29  ;;  %p290_p2 = scmp.lt.s32.totalorder %s284_s29, %s284_s29 }
   0xa   :  { %259 = vset.pattern.permute.xlu0 %v311_v6  ;;  %v50_v21 = vrot.slane %v21_v19, %v370_v18  ;;  %v66_v25 = vrot.slane %v21_v19, %v376_v20  ;;  %v82_v27 = vrot.slane %v21_v19, %v81_v22  ;;  %v98_v34 = vrot.slane %v21_v19, %v97_v28 }
   0xb   :  { %260 = vset.pattern.permute.xlu1 %v309_v2  ;;  %88 = vperm.xlu0 %259, %v22_v0   ;;  %p291_p3 = por %p290_p2, %p289_p1 }
   0xc   :  { %44 = vperm.xlu1 %260, %v23_v5  }
   0xd   :  { %p292_p4 = pnand %p291_p3, %p285_p0 }
   0xf   :  { %261 = vset.pattern.permute.xlu0 %v308_v1 }
  0x10   :  { %34 = vperm.xlu1 %260, %v26_v7   ;;  %60 = vperm.xlu0 %261, %v23_v5   ;;  %v168_v7 = vsub.s32 5, %v367_v17 }
  0x14   :  { %262 = vset.pattern.permute.xlu1 %v310_v4  ;;  %264 = vset.pattern.permute.xlu0 %v309_v2 }
  0x15   :  { %76 = vperm.xlu1 %262, %v23_v5   ;;  %113 = vperm.xlu0 %264, %v24_v8  }
  0x19   :  { %263 = vset.pattern.permute.xlu1 %v311_v6  ;;  %267 = vset.pattern.permute.xlu0 %v310_v4  ;;  %v158_v4 = vsub.s32 4, %v367_v17 }
  0x1a   :  { %92 = vperm.xlu1 %263, %v23_v5   ;;  %133 = vperm.xlu0 %267, %v24_v8  }
  0x1e   :  { %265 = vset.pattern.permute.xlu1 %v309_v2  ;;  %270 = vset.pattern.permute.xlu0 %v312_v10 }
  0x1f   :  { %108 = vperm.xlu1 %265, %v105_v9   ;;  %163 = vperm.xlu0 %270, %v24_v8  }
  0x23   :  { %266 = vset.pattern.permute.xlu1 %v308_v1  ;;  %273 = vset.pattern.permute.xlu0 %v313_v11 }
  0x24   :  { %123 = vperm.xlu1 %266, %v24_v8   ;;  %193 = vperm.xlu0 %273, %v24_v8  }
  0x28   :  { %268 = vset.pattern.permute.xlu1 %v311_v6  ;;  %275 = vset.pattern.permute.xlu0 %v314_v12 }
  0x29   :  { %143 = vperm.xlu1 %268, %v24_v8  }
  0x2d   :  { %269 = vset.pattern.permute.xlu1 %v315_v13 }
  0x2e   :  { %153 = vperm.xlu1 %269, %v24_v8  }
  0x32   :  { %271 = vset.pattern.permute.xlu1 %v316_v14 }
  0x33   :  { %173 = vperm.xlu1 %271, %v24_v8  }
  0x37   :  { %272 = vset.pattern.permute.xlu1 %v317_v15 }
  0x38   :  { %183 = vperm.xlu1 %272, %v24_v8  }
  0x3c   :  { %274 = vset.pattern.permute.xlu1 %v314_v12  ;;  %v178_v12 = vsub.s32 6, %v367_v17 }
  0x3d   :  { %203 = vperm.xlu1 %274, %v24_v8  }
  0x81   :  { %v57_v23 = vpop.permute.xlu1 %56  ;;  %v40_v24 = vpop.permute.xlu0 %39 }
  0x82   :  { %v51_v26 = vmul.f32 %v50_v21, %v40_v24  ;;  %v67_v30 = vmul.f32 %v66_v25, %v57_v23 }
  0x85   :  { %v30_v29 = vpop.permute.xlu0 %29 }
  0x86   :  { %v53_v31 = vadd.f32 %v51_v26, %v30_v29  ;;  %v73_v32 = vpop.permute.xlu1 %72 }
  0x87   :  { %v83_v33 = vmul.f32 %v82_v27, %v73_v32 }
  0x88   :  { %v69_v35 = vadd.f32 %v67_v30, %v53_v31 }
  0x8a   :  { %v85_v36 = vadd.f32 %v83_v33, %v69_v35  ;;  %v89_v37 = vpop.permute.xlu0 %88 }
  0x8b   :  { %v99_v38 = vmul.f32 %v98_v34, %v89_v37  ;;  %v45_v39 = vpop.permute.xlu1 %44 }
  0x8c   :  { %v52_v46 = vmul.f32 %v50_v21, %v45_v39 }
  0x8d   :  { %v101_v40 = vadd.f32 %v99_v38, %v85_v36 }
  0x8f   :  { %276 = vtanh.f32 %v101_v40  ;;  %v35_v41 = vpop.permute.xlu1 %34  ;;  %v61_v45 = vpop.permute.xlu0 %60 }
  0x90   :  { %v54_v48 = vadd.f32 %v52_v46, %v35_v41  ;;  %v68_v49 = vmul.f32 %v66_v25, %v61_v45 }
  0x92   :  { %v70_v54 = vadd.f32 %v68_v49, %v54_v48 }
  0x94   :  { %v77_v42 = vpop.permute.xlu1 %76  ;;  %v114_v52 = vpop.permute.xlu0 %113 }
  0x95   :  { %v84_v51 = vmul.f32 %v82_v27, %v77_v42 }
  0x97   :  { %v86_v57 = vadd.f32 %v84_v51, %v70_v54 }
  0x99   :  { %v277_v43 = vpop.eup %276  ;;  %v93_v44 = vpop.permute.xlu1 %92 }
  0x9a   :  { %v119_v47 = vrot.slane %v277_v43, %v370_v18  ;;  %v100_v55 = vmul.f32 %v98_v34, %v93_v44  ;;  %v129_v56 = vrot.slane %v277_v43, %v376_v20  ;;  %v139_v59 = vrot.slane %v277_v43, %v81_v22  ;;  %v134_v63 = vpop.permute.xlu0 %133 }
  0x9b   :  { %v149_v3 = vrot.slane %v277_v43, %v97_v28  ;;  %v159_v8 = vrot.slane %v277_v43, %v158_v4  ;;  %v169_v14 = vrot.slane %v277_v43, %v168_v7  ;;  %v179_v21 = vrot.slane %v277_v43, %v178_v12 }
  0x9c   :  { %v120_v53 = vmul.f32 %v119_v47, %v114_v52  ;;  %v102_v62 = vadd.f32 %v100_v55, %v86_v57  ;;  %v140_v1 = vmul.f32 %v139_v59, %v134_v63  ;;  %v188_v22 = vsub.s32 7, %v367_v17 }
  0x9e   :  { %v109_v50 = vpop.permute.xlu1 %108  ;;  %278 = vtanh.f32 %v102_v62  ;;  %v164_v13 = vpop.permute.xlu0 %163  ;;  %v189_v27 = vrot.slane %v277_v43, %v188_v22 }
  0x9f   :  { %v121_v60 = vadd.f32 %v120_v53, %v109_v50  ;;  %v170_v16 = vmul.f32 %v169_v14, %v164_v13 }
  0xa3   :  { %v124_v58 = vpop.permute.xlu1 %123  ;;  %v194_v28 = vpop.permute.xlu0 %193 }
  0xa4   :  { %v130_v61 = vmul.f32 %v129_v56, %v124_v58 }
  0xa6   :  { %v131_v0 = vadd.f32 %v130_v61, %v121_v60 }
  0xa8   :  { %v144_v2 = vpop.permute.xlu1 %143  ;;  %v141_v5 = vadd.f32 %v140_v1, %v131_v0  ;;  %v279_v23 = vpop.eup %278 }
  0xa9   :  { %v150_v6 = vmul.f32 %v149_v3, %v144_v2  ;;  %v199_v26 = vrot.slane %v279_v23, %v370_v18  ;;  %v209_v34 = vrot.slane %v279_v23, %v376_v20 }
  0xab   :  { %v151_v10 = vadd.f32 %v150_v6, %v141_v5  ;;  %v200_v32 = vmul.f32 %v199_v26, %v194_v28 }
  0xad   :  { %v154_v9 = vpop.permute.xlu1 %153 }
  0xae   :  { %v160_v11 = vmul.f32 %v159_v8, %v154_v9 }
  0xb0   :  { %v161_v15 = vadd.f32 %v160_v11, %v151_v10 }
  0xb2   :  { %v174_v19 = vpop.permute.xlu1 %173  ;;  %v171_v24 = vadd.f32 %v170_v16, %v161_v15 }
  0xb3   :  { %v180_v25 = vmul.f32 %v179_v21, %v174_v19 }
  0xb5   :  { %v181_v30 = vadd.f32 %v180_v25, %v171_v24 }
  0xb7   :  { %v184_v29 = vpop.permute.xlu1 %183 }
  0xb8   :  { %v190_v31 = vmul.f32 %v189_v27, %v184_v29 }
  0xba   :  { %v191_v33 = vadd.f32 %v190_v31, %v181_v30 }
  0xbc   :  { %v204_v35 = vpop.permute.xlu1 %203  ;;  %v201_v36 = vadd.f32 %v200_v32, %v191_v33 }
  0xbd   :  { %v210_v37 = vmul.f32 %v209_v34, %v204_v35 }
  0xbf   :  { %v211_v38 = vadd.f32 %v210_v37, %v201_v36 }
  0xc1   :  { %v213_v39 = vrot.slane %v211_v38, 1 }
  0xc3   :  { %v215_v17 = vsub.f32 %v211_v38, %v213_v39 }
  0xc5   :  { %v244_v40 = vmul.f32 -1.442695, %v215_v17 }
  0xc7   :  { %280 = vpow2.f32 %v244_v40 }
  0xd1   :  { %v281_v41 = vpop.eup %280 }
  0xd2   :  { %v219_v42 = vadd.f32 1.0, %v281_v41 }
  0xd4   :  { %282 = vrcp.f32 %v219_v42 }
  0xde   :  { %v283_v18 = vpop.eup %282 }
  0xdf   :  { %v222_v43 = vsub.f32 1.0, %v283_v18 }
  0xe1   :  { %v224_v44 = vrot.slane %v222_v43, 7 }
  0xe3   :  { %v227_v20 = vsel %vm226_vm0, %v283_v18, %v224_v44 }
  0xe4   :  { %229 = vst.msk [vmem:[#allocation2] sm:$0x3] %vm228_vm1, %v227_v20 }
  0xe5   :  { %295 = shalt.err (!%p292_p4)
}
  0xe6   :  { %s296_s7 = scalar_lea.hbm %s407_s5, 32 }
  0xe7   :  { %p297_p5 = scmp.ne.s32.totalorder %s407_s5, %s296_s7  ;;  %p300_p6 = scmp.lt.u32.totalorder %s296_s7, %s407_s5 }
  0xe9   :  { %p302_p7 = pnand %p300_p6, %p297_p5 }
  0xeb   :  { %305 = shalt.err (!%p302_p7)
}
  0xec   :  { %239 = dma.vmem_to_hbm [thread:$0]  %s237_s4, 32, %s407_s5, [#allocation3]  }
  0xed   :  { %306 = dma.done.wait [#allocation3], 32  }
  0xee   :  { %307 = vsyncadd [#allocation3], 4294967264 }
  0xef   :  { %243 = vsyncpa [#allocation3], 1 }

</bundles_post_ra>
